<compile_context>
chip_gen: v7x
topology: tpu7x:2x2x1
jax: 0.10.0
libtpu: 0.0.40
codegen_flags: <defaults>
</compile_context>

<pallas_src>
import functools

import jax
import jax.numpy as jnp
from jax.experimental import pallas as pl
from jax.experimental.pallas import tpu as pltpu

EPS = 1e-5


def _round_up(x, m):
    return (x + m - 1) // m * m


def _vmem_capacity_bytes():
    """Best-effort physical VMEM size; conservative v7x default if unknown."""
    try:
        info_fn = getattr(pltpu, "get_tpu_info", None)
        if info_fn is not None:
            cap = getattr(info_fn(), "vmem_capacity_bytes", None)
            if cap:
                return int(cap)
    except Exception:
        pass
    return 64 * 1024 * 1024          # v7x floor; v5e/v6e actually have 128 MiB


def _divisor_tile(total, cap):
    """Largest multiple of 128 that divides `total` and is <= cap (min 128)."""
    best = 128
    t = 128
    while t <= min(cap, total):
        if total % t == 0:
            best = t
        t += 128
    return best


def _pick_tiles(Bp, Kp, Hp, xbytes, budget):
    """Batch/generation-aware tiling (the full batch lives in every block)."""
    def footprint(tn, tk, x_res):
        x_b = (Bp * Kp if x_res else 2 * Bp * tk) * xbytes   # X (resident / dbl-buf)
        w_b = 2 * tn * tk * xbytes                            # W double-buffered
        o_b = 2 * Bp * tn * 4                                 # output double-buffered
        acc = Bp * tn * 4                                     # f32 accumulator scratch
        misc = 8 * tn * 4                                      # gamma/beta blocks
        return x_b + w_b + o_b + acc + misc

    tn = _divisor_tile(Hp, 512)
    # v7x has 2 TensorCores sharded over the "parallel" feature axis: make sure
    # that axis has >=2 blocks whenever H allows it.
    if Hp // tn < 2 and Hp >= 256:
        tn = _divisor_tile(Hp, Hp // 2)
    tk = _divisor_tile(Kp, 512)
    x_resident = Bp * Kp * xbytes <= budget // 3   # leave room for W / out / acc

    # Shrink the contraction tile first; never the lane-dense output dim
    # unless forced.
    while footprint(tn, tk, x_resident) > budget and tk > 128:
        tk = _divisor_tile(Kp, tk // 2)
    while footprint(tn, tk, x_resident) > budget and tn > 128:
        tn = _divisor_tile(Hp, tn // 2)
    if x_resident and footprint(tn, tk, x_resident) > budget:
        x_resident = False
    # TODO(synk): for very large B even (tn, tk)=(128,128) can exceed v7x's
    # 64 MiB; a two-pass BN (B-tiled matmul + separate normalize pass) would be
    # needed there.
    return tn, tk, x_resident, footprint(tn, tk, x_resident)


def _fc_bn_relu_dropout_kernel(seed_ref, x_ref, w_ref, gamma_ref, beta_ref,
                               o_ref, acc_ref, *, batch, drop_p, tn, tk,
                               num_k, x_resident):
    # All pl.program_id / scalar reads stay at the kernel top level (NOT inside
    # pl.when bodies) -- required for interpret-mode lowering, free on hardware;
    # the epilogue closure captures the values.
    j = pl.program_id(0)                       # feature-tile index
    k = pl.program_id(1)                       # contraction-tile index
    col_off = j * tn                           # global feature offset of this tile
    seed_u = seed_ref[0].astype(jnp.uint32)

    if x_resident:
        # X lives fully in VMEM (constant block index -> DMA'd once); slice the
        # current contraction chunk instead of re-streaming from HBM.
        x_blk = x_ref[:, pl.ds(k * tk, tk)]
    else:
        x_blk = x_ref[...]

    # Linear (bias dropped -- BatchNorm's mean subtraction cancels it exactly):
    # (Bp, tk) x (tn, tk)^T with f32 accumulation on the MXU.
    part = jax.lax.dot_general(
        x_blk, w_ref[...],
        dimension_numbers=(((1,), (1,)), ((), ())),
        preferred_element_type=jnp.float32)

    @pl.when(k == 0)
    def _():                                   # first k-step: plain store
        acc_ref[...] = part

    @pl.when(k != 0)
    def _():
        acc_ref[...] += part

    @pl.when(k == num_k - 1)
    def _():
        y = acc_ref[...]                                     # (Bp, tn) f32
        bp = y.shape[0]

        # --- BatchNorm1d training statistics (biased var, eps=1e-5).
        # Two-pass (centered) variance avoids E[y^2]-E[y]^2 cancellation; each
        # of the (bp - batch) zero-padded rows contributes mean^2 to the
        # centered sum of squares, which is subtracted back out exactly.
        inv_b = jnp.float32(1.0 / batch)
        mean = jnp.sum(y, axis=0, keepdims=True) * inv_b
        d = y - mean
        ss = jnp.sum(d * d, axis=0, keepdims=True)
        ss = ss - jnp.float32(bp - batch) * (mean * mean)
        var = jnp.maximum(ss * inv_b, 0.0)
        rstd = jax.lax.rsqrt(var + jnp.float32(EPS))

        # --- Fold BN affine + dropout survivor scale into per-feature (a, c);
        # ReLU commutes with the positive 1/(1-p) scale.
        inv_keep = (jnp.float32(1.0 / (1.0 - drop_p))
                    if drop_p > 0.0 else jnp.float32(1.0))
        g = gamma_ref[...] * rstd                            # (1, tn)
        a = g * inv_keep
        c = (beta_ref[...] - mean * g) * inv_keep
        z = jnp.maximum(y * a + c, 0.0)

        # --- Dropout mask: factored counter hash (O(Bp + tn) heavy mixing plus
        # ~4 cheap per-element finalisers), keyed on the *global* (row, col) so
        # the mask does not repeat across feature tiles.
        if drop_p > 0.0:
            def _mix(v):
                v = v ^ (v >> jnp.uint32(16))
                v = v * jnp.uint32(0x7FEB352D)
                v = v ^ (v >> jnp.uint32(15))
                v = v * jnp.uint32(0x846CA68B)
                v = v ^ (v >> jnp.uint32(16))
                return v

            rows = jax.lax.broadcasted_iota(
                jnp.int32, (bp, 1), 0).astype(jnp.uint32)
            cols = (jax.lax.broadcasted_iota(jnp.int32, (1, z.shape[1]), 1)
                    + col_off).astype(jnp.uint32)
            r_h = _mix(rows * jnp.uint32(0x9E3779B1) ^ seed_u)           # (Bp, 1)
            c_h = _mix(cols * jnp.uint32(0x85EBCA77)
                       ^ (seed_u * jnp.uint32(0xC2B2AE3D)))              # (1, tn)
            h = r_h + c_h                                                # (Bp, tn)
            h = h ^ (h >> jnp.uint32(15))
            h = h * jnp.uint32(0x2C1B3C6D)
            h = h ^ (h >> jnp.uint32(13))
            thr = jnp.uint32(min(int(round(drop_p * 2.0 ** 32)), 2 ** 32 - 1))
            z = jnp.where(h >= thr, z, jnp.float32(0.0))     # P(keep) = 1 - p

        o_ref[...] = z.astype(o_ref.dtype)


def prepare_weights(w, gamma, beta, *, use_bf16_matmul=True):
    """Pad / cast the static parameters once (hoisted out of the per-call path)."""
    H, K = w.shape
    Hp, Kp = _round_up(H, 128), _round_up(K, 128)
    mm_dtype = jnp.bfloat16 if use_bf16_matmul else jnp.float32
    wp = w.astype(jnp.float32)
    if (Hp, Kp) != (H, K):
        wp = jnp.pad(wp, ((0, Hp - H), (0, Kp - K)))
    wp = wp.astype(mm_dtype)
    gp = gamma.astype(jnp.float32).reshape(1, H)
    bp = beta.astype(jnp.float32).reshape(1, H)
    if Hp != H:
        gp = jnp.pad(gp, ((0, 0), (0, Hp - H)))
        bp = jnp.pad(bp, ((0, 0), (0, Hp - H)))
    return dict(w=wp, gamma=gp, beta=bp, H=H, K=K, Hp=Hp, Kp=Kp,
                mm_dtype=mm_dtype)


def fc_bn_relu_dropout(x, w, b, gamma, beta, *, drop_p=0.5, seed=0,
                       use_bf16_matmul=True, prepared=None):
    """Fused Linear -> BatchNorm1d(train) -> ReLU -> Dropout(train) forward.

    x: (B, K) f32.  w: (H, K) (PyTorch Linear layout).  b/gamma/beta: (H,).
    `b` is accepted for API fidelity but unused: BatchNorm's batch-mean
    subtraction cancels the Linear bias exactly.  Pass
    `prepared=prepare_weights(...)` to amortise the weight pad/cast.
    """
    del b
    assert 0.0 <= drop_p < 1.0
    B, K = x.shape
    if prepared is None:
        prepared = prepare_weights(w, gamma, beta,
                                   use_bf16_matmul=use_bf16_matmul)
    assert prepared["K"] == K and prepared["H"] == w.shape[0]
    H, Hp, Kp = prepared["H"], prepared["Hp"], prepared["Kp"]
    mm_dtype = prepared["mm_dtype"]
    xbytes = 2 if mm_dtype == jnp.bfloat16 else 4

    # bf16 packs two rows per sublane -> round the batch to 16 rows, else 8.
    Bp = _round_up(B, 16 if xbytes == 2 else 8)

    # Generation/batch-aware tiling and VMEM limit (full batch in every block).
    cap = _vmem_capacity_bytes()
    budget = int(0.70 * cap)
    tn, tk, x_resident, fp_bytes = _pick_tiles(Bp, Kp, Hp, xbytes, budget)
    vmem_limit = max(32 << 20,
                     min(int(fp_bytes * 1.25) + (2 << 20), int(0.9 * cap)))

    xp = x.astype(jnp.float32)
    if (Bp, Kp) != (B, K):
        xp = jnp.pad(xp, ((0, Bp - B), (0, Kp - K)))
    xp = xp.astype(mm_dtype)
    seed_arr = jnp.array([seed], dtype=jnp.int32)

    num_k = Kp // tk
    kernel = functools.partial(_fc_bn_relu_dropout_kernel, batch=B,
                               drop_p=float(drop_p), tn=tn, tk=tk,
                               num_k=num_k, x_resident=x_resident)

    if x_resident:
        # Constant block index -> X is DMA'd into VMEM once for the whole grid.
        x_spec = pl.BlockSpec((Bp, Kp), lambda i, k, s: (0, 0))
    else:
        x_spec = pl.BlockSpec((Bp, tk), lambda i, k, s: (0, k))

    out = pl.pallas_call(
        kernel,
        out_shape=jax.ShapeDtypeStruct((Bp, Hp), jnp.float32),
        grid_spec=pltpu.PrefetchScalarGridSpec(
            num_scalar_prefetch=1,
            grid=(Hp // tn, num_k),
            in_specs=[
                x_spec,                                            # x
                pl.BlockSpec((tn, tk), lambda i, k, s: (i, k)),    # w, native (H,K)
                pl.BlockSpec((1, tn), lambda i, k, s: (0, i)),     # gamma
                pl.BlockSpec((1, tn), lambda i, k, s: (0, i)),     # beta
            ],
            out_specs=pl.BlockSpec((Bp, tn), lambda i, k, s: (0, i)),
            scratch_shapes=[pltpu.VMEM((Bp, tn), jnp.float32)],
        ),
        compiler_params=pltpu.CompilerParams(
            dimension_semantics=("parallel", "arbitrary"),
            vmem_limit_bytes=vmem_limit,
        ),
    )(seed_arr, xp, prepared["w"], prepared["gamma"], prepared["beta"])
    return out[:B, :H]


if __name__ == "__main__":
    # Shapes implied by the module: X is (batch, in_features) for Linear -> BN1d.
    B, K, H = 8, 32, 32
    drop_p = 0.5

    key = jax.random.PRNGKey(0)
    kx, kw, kb = jax.random.split(key, 3)
    x = jax.random.normal(kx, (B, K), dtype=jnp.float32)
    bound = 1.0 / (K ** 0.5)
    w = jax.random.uniform(kw, (H, K), dtype=jnp.float32, minval=-bound, maxval=bound)
    b = jax.random.uniform(kb, (H,), dtype=jnp.float32, minval=-bound, maxval=bound)
    gamma = jnp.ones((H,), dtype=jnp.float32)    # BatchNorm1d weight init
    beta = jnp.zeros((H,), dtype=jnp.float32)    # BatchNorm1d bias init

    # Correctness check (dropout off, f32 matmul path) vs a pure-JAX reference.
    # The reference includes the Linear bias; BN cancels it, outputs must match.
    # Tolerance is loose enough to absorb MXU default-precision matmul rounding.
    out_nodrop = fc_bn_relu_dropout(x, w, b, gamma, beta, drop_p=0.0,
                                    use_bf16_matmul=False)
    y_ref = x @ w.T + b
    mean = jnp.mean(y_ref, axis=0, keepdims=True)
    var = jnp.mean((y_ref - mean) ** 2, axis=0, keepdims=True)
    ref = jnp.maximum((y_ref - mean) * jax.lax.rsqrt(var + EPS) * gamma + beta, 0.0)
    assert jnp.allclose(out_nodrop, ref, atol=2e-2, rtol=2e-2)

    # Training-mode forward: bf16 weight/activation streaming (f32 MXU
    # accumulation), dropout on, parameters prepared once and reused.
    prep = prepare_weights(w, gamma, beta, use_bf16_matmul=True)
    out = fc_bn_relu_dropout(x, w, b, gamma, beta, drop_p=drop_p, seed=1234,
                             use_bf16_matmul=True, prepared=prep)
    out = jax.block_until_ready(out)
    assert out.shape == (B, H) and out.dtype == jnp.float32
    assert bool(jnp.all(jnp.isfinite(out)))
    # TODO(synk): BatchNorm running_mean/running_var buffers are not updated, and
    # the dropout bitstream differs from torch's RNG (keep statistics match).
    print("KERNEL_OK")
</pallas_src>

<mosaic_0001>
module attributes {stable_mosaic.version = 11 : i64} {
  func.func @_fc_bn_relu_dropout_kernel(%arg0: i32, %arg1: i32, %arg2: memref<1xi32, #tpu.memory_space<smem>>, %arg3: memref<8x128xf32, #tpu.memory_space<vmem>>, %arg4: memref<128x128xf32, #tpu.memory_space<vmem>>, %arg5: memref<1x128xf32, #tpu.memory_space<vmem>>, %arg6: memref<1x128xf32, #tpu.memory_space<vmem>>, %arg7: memref<8x128xf32, #tpu.memory_space<vmem>>, %arg8: memref<8x128xf32, #tpu.memory_space<vmem>>) attributes {dimension_semantics = [#tpu.dimension_semantics<parallel>, #tpu.dimension_semantics<arbitrary>], iteration_bounds = array<i64: 1, 1>, scalar_prefetch = 1 : i64, scratch_operands = 1 : i64, tpu.core_type = #tpu.core_type<tc>, window_params = [{pipeline_mode = #tpu.pipeline_mode<synchronous>, transform_indices = @transform_0, window_bounds = array<i64: 8, 128>}, {transform_indices = @transform_1, window_bounds = array<i64: 128, 128>}, {transform_indices = @transform_2, window_bounds = array<i64: 1, 128>}, {transform_indices = @transform_3, window_bounds = array<i64: 1, 128>}, {transform_indices = @transform_4, window_bounds = array<i64: 8, 128>}]} {
    %c128_i32 = arith.constant 128 : i32
    %0 = arith.muli %arg1, %c128_i32 : i32
    %c0 = arith.constant 0 : index
    %1 = arith.index_cast %0 : i32 to index
    %2 = vector.load %arg3[%c0, %1] : memref<8x128xf32, #tpu.memory_space<vmem>>, vector<8x128xf32>
    %c0_0 = arith.constant 0 : index
    %c0_1 = arith.constant 0 : index
    %3 = vector.load %arg4[%c0_0, %c0_1] : memref<128x128xf32, #tpu.memory_space<vmem>>, vector<128x128xf32>
    %cst = arith.constant dense<0.000000e+00> : vector<8x128xf32>
    %4 = tpu.matmul %2, %3, %cst {dimension_numbers = #tpu.dot_dimension_numbers<[1], [1], [0], [0], [0, 0, 1, 0], [], []>} : vector<8x128xf32>, vector<128x128xf32>, vector<8x128xf32> -> vector<8x128xf32>
    %c0_i32 = arith.constant 0 : i32
    %5 = arith.cmpi eq, %arg1, %c0_i32 : i32
    %6 = arith.extui %5 : i1 to i32
    %c0_i32_2 = arith.constant 0 : i32
    %7 = arith.cmpi ne, %6, %c0_i32_2 : i32
    scf.if %7 {
      %c0_7 = arith.constant 0 : index
      %c0_8 = arith.constant 0 : index
      %14 = vector.load %arg8[%c0_7, %c0_8] : memref<8x128xf32, #tpu.memory_space<vmem>>, vector<8x128xf32>
      tpu.vector_store %arg8[%c0_7, %c0_8], %4 {strides = array<i32>} : memref<8x128xf32, #tpu.memory_space<vmem>>, vector<8x128xf32>,
    } else {
    }
    %c0_i32_3 = arith.constant 0 : i32
    %8 = arith.cmpi ne, %arg1, %c0_i32_3 : i32
    %9 = arith.extui %8 : i1 to i32
    %c0_i32_4 = arith.constant 0 : i32
    %10 = arith.cmpi ne, %9, %c0_i32_4 : i32
    scf.if %10 {
      %c0_7 = arith.constant 0 : index
      %c0_8 = arith.constant 0 : index
      %14 = vector.load %arg8[%c0_7, %c0_8] : memref<8x128xf32, #tpu.memory_space<vmem>>, vector<8x128xf32>
      %15 = arith.addf %14, %4 : vector<8x128xf32>
      %c0_9 = arith.constant 0 : index
      %c0_10 = arith.constant 0 : index
      %16 = vector.load %arg8[%c0_9, %c0_10] : memref<8x128xf32, #tpu.memory_space<vmem>>, vector<8x128xf32>
      tpu.vector_store %arg8[%c0_9, %c0_10], %15 {strides = array<i32>} : memref<8x128xf32, #tpu.memory_space<vmem>>, vector<8x128xf32>,
    } else {
    }
    %c0_i32_5 = arith.constant 0 : i32
    %11 = arith.cmpi eq, %arg1, %c0_i32_5 : i32
    %12 = arith.extui %11 : i1 to i32
    %c0_i32_6 = arith.constant 0 : i32
    %13 = arith.cmpi ne, %12, %c0_i32_6 : i32
    scf.if %13 {
      %c0_7 = arith.constant 0 : index
      %c0_8 = arith.constant 0 : index
      %14 = vector.load %arg8[%c0_7, %c0_8] : memref<8x128xf32, #tpu.memory_space<vmem>>, vector<8x128xf32>
      %cst_9 = arith.constant dense<0.000000e+00> : vector<128xf32>
      %15 = vector.multi_reduction <add>, %14, %cst_9 [0] : vector<8x128xf32> to vector<128xf32>
      %16 = vector.shape_cast %15 : vector<128xf32> to vector<1x128xf32>
      %cst_10 = arith.constant 1.250000e-01 : f32
      %17 = vector.broadcast %cst_10 : f32 to vector<1x128xf32>
      %18 = arith.mulf %16, %17 : vector<1x128xf32>
      %19 = vector.broadcast %18 : vector<1x128xf32> to vector<8x128xf32>
      %20 = arith.subf %14, %19 : vector<8x128xf32>
      %21 = arith.mulf %20, %20 : vector<8x128xf32>
      %cst_11 = arith.constant dense<0.000000e+00> : vector<128xf32>
      %22 = vector.multi_reduction <add>, %21, %cst_11 [0] : vector<8x128xf32> to vector<128xf32>
      %23 = vector.shape_cast %22 : vector<128xf32> to vector<1x128xf32>
      %24 = arith.mulf %18, %18 : vector<1x128xf32>
      %cst_12 = arith.constant 0.000000e+00 : f32
      %25 = vector.broadcast %cst_12 : f32 to vector<1x128xf32>
      %26 = arith.mulf %25, %24 : vector<1x128xf32>
      %27 = arith.subf %23, %26 : vector<1x128xf32>
      %cst_13 = arith.constant 1.250000e-01 : f32
      %28 = vector.broadcast %cst_13 : f32 to vector<1x128xf32>
      %29 = arith.mulf %27, %28 : vector<1x128xf32>
      %cst_14 = arith.constant 0.000000e+00 : f32
      %30 = vector.broadcast %cst_14 : f32 to vector<1x128xf32>
      %31 = arith.maximumf %29, %30 : vector<1x128xf32>
      %cst_15 = arith.constant 9.99999974E-6 : f32
      %32 = vector.broadcast %cst_15 : f32 to vector<1x128xf32>
      %33 = arith.addf %31, %32 : vector<1x128xf32>
      %34 = math.rsqrt %33 : vector<1x128xf32>
      %c0_16 = arith.constant 0 : index
      %c0_17 = arith.constant 0 : index
      %35 = vector.load %arg5[%c0_16, %c0_17] : memref<1x128xf32, #tpu.memory_space<vmem>>, vector<1x128xf32>
      %36 = arith.mulf %35, %34 : vector<1x128xf32>
      %cst_18 = arith.constant 1.000000e+00 : f32
      %37 = vector.broadcast %cst_18 : f32 to vector<1x128xf32>
      %38 = arith.mulf %36, %37 : vector<1x128xf32>
      %c0_19 = arith.constant 0 : index
      %c0_20 = arith.constant 0 : index
      %39 = vector.load %arg6[%c0_19, %c0_20] : memref<1x128xf32, #tpu.memory_space<vmem>>, vector<1x128xf32>
      %40 = arith.mulf %18, %36 : vector<1x128xf32>
      %41 = arith.subf %39, %40 : vector<1x128xf32>
      %cst_21 = arith.constant 1.000000e+00 : f32
      %42 = vector.broadcast %cst_21 : f32 to vector<1x128xf32>
      %43 = arith.mulf %41, %42 : vector<1x128xf32>
      %44 = vector.broadcast %38 : vector<1x128xf32> to vector<8x128xf32>
      %45 = arith.mulf %14, %44 : vector<8x128xf32>
      %46 = vector.broadcast %43 : vector<1x128xf32> to vector<8x128xf32>
      %47 = arith.addf %45, %46 : vector<8x128xf32>
      %cst_22 = arith.constant 0.000000e+00 : f32
      %48 = vector.broadcast %cst_22 : f32 to vector<8x128xf32>
      %49 = arith.maximumf %47, %48 : vector<8x128xf32>
      %c0_23 = arith.constant 0 : index
      %c0_24 = arith.constant 0 : index
      %50 = vector.load %arg7[%c0_23, %c0_24] : memref<8x128xf32, #tpu.memory_space<vmem>>, vector<8x128xf32>
      tpu.vector_store %arg7[%c0_23, %c0_24], %49 {strides = array<i32>} : memref<8x128xf32, #tpu.memory_space<vmem>>, vector<8x128xf32>,
    } else {
    }
    return
  }
  func.func @transform_0(%arg0: i32, %arg1: i32, %arg2: memref<1xi32, #tpu.memory_space<smem>>) -> (i32, i32) {
    %c0_i32 = arith.constant 0 : i32
    %c0_i32_0 = arith.constant 0 : i32
    %c0_i32_1 = arith.constant 0 : i32
    return %c0_i32, %c0_i32_0 : i32, i32
  }
  func.func @transform_1(%arg0: i32, %arg1: i32, %arg2: memref<1xi32, #tpu.memory_space<smem>>) -> (i32, i32) {
    %c0_i32 = arith.constant 0 : i32
    return %arg0, %arg1 : i32, i32
  }
  func.func @transform_2(%arg0: i32, %arg1: i32, %arg2: memref<1xi32, #tpu.memory_space<smem>>) -> (i32, i32) {
    %c0_i32 = arith.constant 0 : i32
    %c0_i32_0 = arith.constant 0 : i32
    return %c0_i32, %arg0 : i32, i32
  }
  func.func @transform_3(%arg0: i32, %arg1: i32, %arg2: memref<1xi32, #tpu.memory_space<smem>>) -> (i32, i32) {
    %c0_i32 = arith.constant 0 : i32
    %c0_i32_0 = arith.constant 0 : i32
    return %c0_i32, %arg0 : i32, i32
  }
  func.func @transform_4(%arg0: i32, %arg1: i32, %arg2: memref<1xi32, #tpu.memory_space<smem>>) -> (i32, i32) {
    %c0_i32 = arith.constant 0 : i32
    %c0_i32_0 = arith.constant 0 : i32
    return %c0_i32, %arg0 : i32, i32
  }
}

</mosaic_0001>

<bundles_post_ra>
// kernel: tpu_custom_call.1
= control target key start
LH: loop header
LB: loop body
LE: loop exit
PB: predicated region body
PF: predicated region fallthrough
CT: control target
= control target key end

     0   :  { %11 = vsyncpa [#allocation6], 0  ;;  %s458_s0 = inlined_call_operand.<no memory space> [shape: s32[1], index: 0, kind: input, shape index: {}]   ;;  %s459_s1 = inlined_call_operand.hbm [shape: f32[8,128], index: 1, kind: input, shape index: {}]   ;;  %s460_s2 = inlined_call_operand.hbm [shape: f32[128,128], index: 2, kind: input, shape index: {}]   ;;  %s461_s3 = inlined_call_operand.vmem [shape: f32[1,128], index: 3, kind: input, shape index: {}]   ;;  %s462_s4 = inlined_call_operand.vmem [shape: f32[1,128], index: 4, kind: input, shape index: {}]   ;;  %s463_s5 = inlined_call_operand.hbm [shape: f32[8,128], index: 5, kind: output, shape index: {}]  }
   0x1   :  { %12 = vsyncpa [#allocation9], 0 }
   0x2   :  { %13 = vsyncpa [#allocation7], 0  ;;  %s371_s18 = smov [#allocation5]   ;;  %s372_s19 = smov [#allocation8]  }
   0x3   :  { %s20_s0 = sshll.u32 %s371_s18, 4  ;;  %s29_s20 = sshll.u32 %s372_s19, 4  ;;  %s21_s0 = int_to_ptr.vmem [resolvable:$true] %s20_s0  ;;  %s409_s20 = int_to_ptr.vmem [resolvable:$true] %s29_s20 }
   0x4   :  { %s299_s23 = scalar_lea.hbm %s459_s1, 128 }
   0x5   :  { %p300_p0 = scmp.ne.s32.totalorder %s459_s1, %s299_s23  ;;  %p303_p1 = scmp.lt.u32.totalorder %s299_s23, %s459_s1 }
   0x7   :  { %p305_p2 = pnand %p303_p1, %p300_p0 }
   0x9   :  { %308 = shalt.err (!%p305_p2)
}
   0xa   :  { %s309_s28 = scalar_lea.vmem %s21_s0, 128  ;;  %p314_p4 = scmp.lt.s32.totalorder %s21_s0, %s21_s0 }
   0xb   :  { %p310_p3 = scmp.ne.s32.totalorder %s21_s0, %s309_s28  ;;  %p315_p5 = scmp.lt.s32.totalorder %s309_s28, %s309_s28 }
   0xd   :  { %p316_p6 = por %p315_p5, %p314_p4 }
   0xf   :  { %p317_p7 = pnand %p316_p6, %p310_p3 }
  0x11   :  { %320 = shalt.err (!%p317_p7)
}
  0x12   :  { %23 = dma.hbm_to_vmem [thread:$0]  %s459_s1, 128, %s21_s0, [#allocation6]  }
  0x13   :  { %s321_s8 = scalar_lea.hbm %s460_s2, 2048 }
  0x14   :  { %p322_p8 = scmp.ne.s32.totalorder %s460_s2, %s321_s8  ;;  %p325_p9 = scmp.lt.u32.totalorder %s321_s8, %s460_s2 }
  0x16   :  { %p327_p10 = pnand %p325_p9, %p322_p8 }
  0x18   :  { %330 = shalt.err (!%p327_p10)
}
  0x19   :  { %s331_s13 = scalar_lea.vmem %s409_s20, 2048  ;;  %p336_p12 = scmp.lt.s32.totalorder %s409_s20, %s409_s20 }
  0x1a   :  { %p332_p11 = scmp.ne.s32.totalorder %s409_s20, %s331_s13  ;;  %p337_p13 = scmp.lt.s32.totalorder %s331_s13, %s331_s13 }
  0x1c   :  { %p338_p0 = por %p337_p13, %p336_p12 }
  0x1e   :  { %p339_p1 = pnand %p338_p0, %p332_p11 }
  0x20   :  { %342 = shalt.err (!%p339_p1)
}
  0x21   :  { %s373_s1 = smov 128   ;;  %s374_s14 = smov 8  }
  0x22   :  { %35 = dma.hbm_to_vmem [thread:$0]  %s460_s2, 2048, %s409_s20, [#allocation9], %s373_s1, %s373_s1, %s374_s14  }
  0x23   :  { %365 = dma.done.wait [#allocation6], 128  }
  0x24   :  { %366 = vsyncadd [#allocation6], 4294967168 }
  0x25   :  { %367 = dma.done.wait [#allocation9], 2048  }
  0x26   :  { %368 = vsyncadd [#allocation9], 4294965248  ;;  %v375_v0 = vmov 0.0|0.0   ;;  %vm376_vm0 = vmmov 0   ;;  %v377_v1 = vmov 0.0   ;;  %v51_v2 = vld [vmem:[#allocation8] sm:$0xff]  ;;  %v181_v50 = vlaneseq }
  0x27   :  { %265 = vmatprep.subr.bf16.mxu0 %v375_v0  ;;  %262 = vmatprep.mubr.msk.f32.mxu0 %vm376_vm0, %v377_v1  ;;  %v52_v3 = vld [vmem:[#allocation8 + $0x8] sm:$0xff]  ;;  %v53_v5 = vld [vmem:[#allocation8 + $0x10] sm:$0xff]  ;;  %v54_v6 = vld [vmem:[#allocation8 + $0x18] sm:$0xff]  ;;  %s378_s19 = smov [#allocation10]  }
  0x28   :  { %v266_v4 = vpack.c.bf16 %v52_v3, %v51_v2  ;;  %v269_v7 = vpack.c.bf16 %v54_v6, %v53_v5  ;;  %v55_v8 = vld [vmem:[#allocation8 + $0x20] sm:$0xff]  ;;  %v56_v9 = vld [vmem:[#allocation8 + $0x28] sm:$0xff]  ;;  %v57_v11 = vld [vmem:[#allocation8 + $0x30] sm:$0xff]  ;;  %v182_v51 = vshrl.u32 %v181_v50, 7  ;;  %s202_s20 = sshll.u32 %s378_s19, 4  ;;  %s203_s20 = int_to_ptr.vmem [resolvable:$true] %s202_s20 }
  0x29   :  { %v272_v10 = vpack.c.bf16 %v56_v9, %v55_v8  ;;  %v58_v12 = vld [vmem:[#allocation8 + $0x38] sm:$0xff]  ;;  %v59_v14 = vld [vmem:[#allocation8 + $0x40] sm:$0xff]  ;;  %v60_v15 = vld [vmem:[#allocation8 + $0x48] sm:$0xff]  ;;  %s343_s21 = scalar_lea.vmem %s203_s20, 128  ;;  %p348_p3 = scmp.lt.s32.totalorder %s203_s20, %s203_s20 }
  0x2a   :  { %267 = vmatpush3.bf16.xpose.msra.mxu0 %v266_v4  ;;  %v275_v13 = vpack.c.bf16 %v58_v12, %v57_v11  ;;  %v278_v16 = vpack.c.bf16 %v60_v15, %v59_v14  ;;  %v61_v17 = vld [vmem:[#allocation8 + $0x50] sm:$0xff]  ;;  %v62_v18 = vld [vmem:[#allocation8 + $0x58] sm:$0xff]  ;;  %v63_v20 = vld [vmem:[#allocation8 + $0x60] sm:$0xff]  ;;  %v183_v53 = vsub.s32 0, %v182_v51  ;;  %p344_p2 = scmp.ne.s32.totalorder %s203_s20, %s343_s21  ;;  %p349_p4 = scmp.lt.s32.totalorder %s343_s21, %s343_s21 }
  0x2b   :  { %268 = vmatprep.subr.bf16.mxu0 %v375_v0  ;;  %v281_v19 = vpack.c.bf16 %v62_v18, %v61_v17  ;;  %v64_v21 = vld [vmem:[#allocation8 + $0x68] sm:$0xff]  ;;  %v65_v23 = vld [vmem:[#allocation8 + $0x70] sm:$0xff]  ;;  %v66_v24 = vld [vmem:[#allocation8 + $0x78] sm:$0xff] }
  0x2c   :  { %v284_v22 = vpack.c.bf16 %v64_v21, %v63_v20  ;;  %v287_v25 = vpack.c.bf16 %v66_v24, %v65_v23  ;;  %v50_v26 = vld [vmem:[#allocation5] sm:$0xff]  ;;  %p350_p5 = por %p349_p4, %p348_p3 }
  0x2d   :  { %v175_v52 = vld [vmem:[%s461_s3] sm:$0x1] }
  0x2e   :  { %v177_v56 = vld [vmem:[%s462_s4] sm:$0x1]  ;;  %p351_p6 = pnand %p350_p5, %p344_p2 }
  0x32   :  { %270 = vmatpush3.bf16.xpose.msra.mxu0 %v269_v7 }
  0x33   :  { %271 = vmatprep.subr.bf16.mxu0 %v375_v0 }
  0x3a   :  { %273 = vmatpush3.bf16.xpose.msra.mxu0 %v272_v10 }
  0x3b   :  { %274 = vmatprep.subr.bf16.mxu0 %v375_v0 }
  0x42   :  { %276 = vmatpush3.bf16.xpose.msra.mxu0 %v275_v13 }
  0x43   :  { %277 = vmatprep.subr.bf16.mxu0 %v375_v0 }
  0x4a   :  { %279 = vmatpush3.bf16.xpose.msra.mxu0 %v278_v16 }
  0x4b   :  { %280 = vmatprep.subr.bf16.mxu0 %v375_v0 }
  0x52   :  { %282 = vmatpush3.bf16.xpose.msra.mxu0 %v281_v19 }
  0x53   :  { %283 = vmatprep.subr.bf16.mxu0 %v375_v0 }
  0x5a   :  { %285 = vmatpush3.bf16.xpose.msra.mxu0 %v284_v22 }
  0x5b   :  { %286 = vmatprep.subr.bf16.mxu0 %v375_v0 }
  0x62   :  { %288 = vmatpush3.bf16.xpose.msra.mxu0 %v287_v25 }
  0x69   :  { %263 = vmatmul.mubr.f32.vlgmr.msra.gmra.mrb[0].mxu0 %v50_v26 }
 0x13c   :  { %v133_v27 = vpop.f32.mrb[0].mxu0 }
 0x13d   :  { %v153_v28 = vrot.slane %v133_v27, 4  ;;  %v264_v29 = vpop.f32.mrb[1].mxu0 }
 0x13f   :  { %v154_v30 = vadd.f32 %v153_v28, %v133_v27 }
 0x141   :  { %v155_v31 = vrot.slane %v154_v30, 2 }
 0x143   :  { %v156_v32 = vadd.f32 %v155_v31, %v154_v30 }
 0x145   :  { %v157_v33 = vrot.slane %v156_v32, 1 }
 0x147   :  { %v158_v34 = vadd.f32 %v157_v33, %v156_v32 }
 0x149   :  { %v159_v35 = vmul.f32 0.125, %v158_v34 }
 0x14b   :  { %v160_v36 = vsub.f32 %v133_v27, %v159_v35  ;;  %v168_v42 = vmul.f32 %v159_v35, %v159_v35 }
 0x14d   :  { %v161_v37 = vmul.f32 %v160_v36, %v160_v36  ;;  %v169_v45 = vmul.f32 0.0, %v168_v42 }
 0x14f   :  { %v162_v38 = vrot.slane %v161_v37, 4 }
 0x151   :  { %v163_v39 = vadd.f32 %v162_v38, %v161_v37 }
 0x153   :  { %v164_v40 = vrot.slane %v163_v39, 2 }
 0x155   :  { %v165_v41 = vadd.f32 %v164_v40, %v163_v39 }
 0x157   :  { %v166_v43 = vrot.slane %v165_v41, 1 }
 0x159   :  { %v167_v44 = vadd.f32 %v166_v43, %v165_v41 }
 0x15b   :  { %v170_v46 = vsub.f32 %v167_v44, %v169_v45 }
 0x15d   :  { %v171_v47 = vmul.f32 0.125, %v170_v46 }
 0x15f   :  { %v172_v48 = vmax.f32 %v171_v47, 0.0 }
 0x161   :  { %v173_v49 = vadd.f32 1e-05, %v172_v48 }
 0x163   :  { %297 = vrsqrt.f32 %v173_v49 }
 0x16d   :  { %v298_v54 = vpop.eup %297 }
 0x16e   :  { %v176_v55 = vmul.f32 %v298_v54, %v175_v52 }
 0x170   :  { %v184_v57 = vrot.slane %v176_v55, %v183_v53  ;;  %v178_v58 = vmul.f32 %v176_v55, %v159_v35 }
 0x172   :  { %v179_v59 = vsub.f32 %v177_v56, %v178_v58  ;;  %v186_v60 = vmul.f32 %v184_v57, %v133_v27 }
 0x174   :  { %v191_v61 = vrot.slane %v179_v59, %v183_v53 }
 0x176   :  { %v193_v62 = vadd.f32 %v191_v61, %v186_v60 }
 0x178   :  { %v194_v63 = vmax.f32 %v193_v62, 0.0 }
 0x17a   :  { %195 = vst [vmem:[#allocation10] sm:$0xff] %v194_v63 }
 0x17b   :  { %354 = shalt.err (!%p351_p6)
}
 0x17c   :  { %s355_s22 = scalar_lea.hbm %s463_s5, 128 }
 0x17d   :  { %p356_p7 = scmp.ne.s32.totalorder %s463_s5, %s355_s22  ;;  %p359_p8 = scmp.lt.u32.totalorder %s355_s22, %s463_s5 }
 0x17f   :  { %p361_p9 = pnand %p359_p8, %p356_p7 }
 0x181   :  { %364 = shalt.err (!%p361_p9)
}
 0x182   :  { %205 = dma.vmem_to_hbm [thread:$0]  %s203_s20, 128, %s463_s5, [#allocation7]  }
 0x183   :  { %369 = dma.done.wait [#allocation7], 128  }
 0x184   :  { %370 = vsyncadd [#allocation7], 4294967168 }
 0x185   :  { %209 = vsyncpa [#allocation6], 1 }
 0x186   :  { %210 = vsyncpa [#allocation9], 1 }
 0x187   :  { %211 = vsyncpa [#allocation7], 1 }

</bundles_post_ra>
